<compile_context>
chip_gen: v5e
topology: v5e:2x2
jax: 0.10.0
libtpu: 0.0.40
codegen_flags: <defaults>
</compile_context>

<pallas_src>
import jax
import jax.numpy as jnp
from jax.experimental import pallas as pl
from jax.experimental.pallas import tpu as pltpu


def _packed_linear_kernel(z_ref, w_ref, b_ref, o_ref):
    """One M-tile: lane-dense (rows, R*K) x (R*K, R*N) block-diagonal projection + bias."""
    y = jnp.dot(z_ref[...], w_ref[...], preferred_element_type=jnp.float32)  # MXU
    y = y + b_ref[...]                                                        # bias + folded inverse-transform
    o_ref[...] = y.astype(o_ref.dtype)


def generator_forward(batch_size, n_lags, w, b, scale, shift, key,
                      *, return_noise=False, max_rows_per_tile=8192,
                      min_parallel_tiles=2, out_dtype=jnp.float32):
    """GeneratorBase.forward: returns (batch_size, n_lags, output_dim) [optionally also the noise]."""
    K, N = w.shape

    # Fold pipeline.inverse_transform (x*scale + shift) into the linear map (host-side, tiny).
    w_eff = (w * scale).astype(jnp.float32)           # (K, N)
    b_eff = (b * scale + shift).astype(jnp.float32)   # (1, N)

    # Lane-packing factor: R logical rows per physical row so the output minor dim is R*N = 128.
    R = 128 // N if (N <= 128 and 128 % N == 0) else 1

    M = batch_size * n_lags                            # logical rows
    m_rows = pl.cdiv(M, R)                             # packed rows needed

    # --- tiling over packed rows -------------------------------------------------------------
    n_tiles = pl.cdiv(M, max(R, max_rows_per_tile))
    # Keep >= 2 tiles when there is enough work so dual-TC parts (v7x) shard the parallel axis.
    if n_tiles < min_parallel_tiles and M >= min_parallel_tiles * 8 * R:
        n_tiles = min_parallel_tiles
    if n_tiles > 1:
        tm_rows = ((pl.cdiv(m_rows, n_tiles) + 7) // 8) * 8   # sublane multiple of 8
        m_rows_pad = tm_rows * n_tiles
    else:
        tm_rows = m_rows                                      # single block == full array: no 8-pad needed
        m_rows_pad = m_rows
    m_pad = m_rows_pad * R

    # --- forward_ : latent noise, generated directly in the packed layout ---------------------
    # Row-major (m_rows_pad, R*K) is bit-identical to the logical (m_pad, K) noise matrix.
    z = jax.random.normal(key, (m_rows_pad, R * K), dtype=jnp.float32)

    # --- block-diagonal weights: out[:, r*N:(r+1)*N] = z[:, r*K:(r+1)*K] @ w_eff ---------------
    if R > 1:
        eye = jnp.eye(R, dtype=jnp.float32)
        w_blk = jnp.einsum("rs,kn->rksn", eye, w_eff).reshape(R * K, R * N)   # (1024, 128) for K=32,N=4
        b_blk = jnp.tile(b_eff, (1, R))                                       # (1, 128)
    else:
        w_blk, b_blk = w_eff, b_eff

    out = pl.pallas_call(
        _packed_linear_kernel,
        out_shape=jax.ShapeDtypeStruct((m_rows_pad, R * N), out_dtype),
        grid_spec=pltpu.PrefetchScalarGridSpec(
            num_scalar_prefetch=0,
            grid=(n_tiles,),
            in_specs=[
                pl.BlockSpec((tm_rows, R * K), lambda i: (i, 0)),   # streamed noise tile
                pl.BlockSpec((R * K, R * N), lambda i: (0, 0)),     # block-diag weights: VMEM-resident
                pl.BlockSpec((1, R * N), lambda i: (0, 0)),         # bias: VMEM-resident
            ],
            out_specs=pl.BlockSpec((tm_rows, R * N), lambda i: (i, 0)),
        ),
        compiler_params=pltpu.CompilerParams(
            dimension_semantics=("parallel",),   # independent M-tiles: megacore-shardable
        ),
    )(z, w_blk, b_blk)

    # Row-major (m_rows_pad, R*N) == (m_pad, N); slice is a no-op when m_pad == M.
    x = out.reshape(m_pad, N)[:M].reshape(batch_size, n_lags, N)
    if return_noise:
        z_log = z.reshape(m_pad, K)[:M].reshape(batch_size, n_lags, K)
        return x, z_log
    return x


if __name__ == "__main__":
    input_dim = 32
    output_dim = 4

    key = jax.random.PRNGKey(0)
    k_w, k_b, k_s, k_m, k_z1, k_z2 = jax.random.split(key, 6)

    # Deterministic "parameters": linear projection + inverse-transform affine.
    w = jax.random.normal(k_w, (input_dim, output_dim), dtype=jnp.float32) * 0.1
    b = jax.random.normal(k_b, (1, output_dim), dtype=jnp.float32) * 0.01
    scale = jnp.abs(jax.random.normal(k_s, (1, output_dim), dtype=jnp.float32)) + 0.5
    shift = jax.random.normal(k_m, (1, output_dim), dtype=jnp.float32)

    w_eff = w * scale
    b_eff = b * scale + shift

    # --- 1) exact check of the deterministic math (small shapes, single packed tile) ---
    batch_size, n_lags = 2, 8
    x_small, z_small = generator_forward(batch_size, n_lags, w, b, scale, shift,
                                         key=k_z1, return_noise=True)
    x_small, z_small = jax.block_until_ready((x_small, z_small))
    assert x_small.shape == (batch_size, n_lags, output_dim)
    ref = jnp.dot(z_small.reshape(-1, input_dim), w_eff,
                  precision=jax.lax.Precision.HIGHEST) + b_eff
    ref = ref.reshape(batch_size, n_lags, output_dim)
    assert jnp.allclose(x_small, ref, atol=2e-2, rtol=2e-2), "block-diag/packing/tiling mismatch"

    # --- 2) larger path: lane-dense tiles, >= 2 parallel grid steps ---
    B2, L2 = 64, 32   # M = 2048 logical rows -> 64 packed rows -> two 32-row parallel tiles
    x1 = generator_forward(B2, L2, w, b, scale, shift, key=k_z1)
    x2 = generator_forward(B2, L2, w, b, scale, shift, key=k_z1)
    x3 = generator_forward(B2, L2, w, b, scale, shift, key=k_z2)
    x1, x2, x3 = jax.block_until_ready((x1, x2, x3))
    assert x1.shape == (B2, L2, output_dim)
    assert bool(jnp.all(jnp.isfinite(x1)))
    assert bool(jnp.array_equal(x1, x2)), "same key must reproduce"
    assert not bool(jnp.array_equal(x1, x3)), "different key must differ"

    # Loose statistical sanity: x ~ N(b_eff, ||w_eff_col||^2) per column (very wide margins).
    flat = x1.reshape(-1, output_dim)
    col_mean = flat.mean(axis=0)
    col_std = flat.std(axis=0)
    expected_std = jnp.sqrt(jnp.sum(w_eff ** 2, axis=0))
    assert bool(jnp.all(jnp.abs(col_mean - b_eff[0]) < 0.2 + 0.25 * expected_std))
    assert bool(jnp.all(col_std > 0.5 * expected_std))
    assert bool(jnp.all(col_std < 1.5 * expected_std))

    print("KERNEL_OK")
</pallas_src>

<mosaic_0001>
module attributes {stable_mosaic.version = 11 : i64} {
  func.func @_packed_linear_kernel(%arg0: i32, %arg1: memref<1x1024xf32, #tpu.memory_space<vmem>>, %arg2: memref<1024x128xf32, #tpu.memory_space<vmem>>, %arg3: memref<1x128xf32, #tpu.memory_space<vmem>>, %arg4: memref<1x128xf32, #tpu.memory_space<vmem>>) attributes {dimension_semantics = [#tpu.dimension_semantics<parallel>], iteration_bounds = array<i64: 1>, scalar_prefetch = 0 : i64, scratch_operands = 0 : i64, tpu.core_type = #tpu.core_type<tc>, window_params = [{transform_indices = @transform_0, window_bounds = array<i64: 1, 1024>}, {pipeline_mode = #tpu.pipeline_mode<synchronous>, transform_indices = @transform_1, window_bounds = array<i64: 1024, 128>}, {pipeline_mode = #tpu.pipeline_mode<synchronous>, transform_indices = @transform_2, window_bounds = array<i64: 1, 128>}, {transform_indices = @transform_3, window_bounds = array<i64: 1, 128>}]} {
    %c0 = arith.constant 0 : index
    %c0_0 = arith.constant 0 : index
    %0 = vector.load %arg1[%c0, %c0_0] : memref<1x1024xf32, #tpu.memory_space<vmem>>, vector<1x1024xf32>
    %c0_1 = arith.constant 0 : index
    %c0_2 = arith.constant 0 : index
    %1 = vector.load %arg2[%c0_1, %c0_2] : memref<1024x128xf32, #tpu.memory_space<vmem>>, vector<1024x128xf32>
    %cst = arith.constant dense<0.000000e+00> : vector<1x128xf32>
    %2 = tpu.matmul %0, %1, %cst {dimension_numbers = #tpu.dot_dimension_numbers<[1], [0], [0], [1], [0, 0, 1, 1], [], []>} : vector<1x1024xf32>, vector<1024x128xf32>, vector<1x128xf32> -> vector<1x128xf32>
    %c0_3 = arith.constant 0 : index
    %c0_4 = arith.constant 0 : index
    %3 = vector.load %arg3[%c0_3, %c0_4] : memref<1x128xf32, #tpu.memory_space<vmem>>, vector<1x128xf32>
    %4 = arith.addf %2, %3 : vector<1x128xf32>
    %c0_5 = arith.constant 0 : index
    %c0_6 = arith.constant 0 : index
    %5 = vector.load %arg4[%c0_5, %c0_6] : memref<1x128xf32, #tpu.memory_space<vmem>>, vector<1x128xf32>
    tpu.vector_store %arg4[%c0_5, %c0_6], %4 {strides = array<i32>} : memref<1x128xf32, #tpu.memory_space<vmem>>, vector<1x128xf32>,
    return
  }
  func.func @transform_0(%arg0: i32) -> (i32, i32) {
    %c0_i32 = arith.constant 0 : i32
    %c0_i32_0 = arith.constant 0 : i32
    return %arg0, %c0_i32 : i32, i32
  }
  func.func @transform_1(%arg0: i32) -> (i32, i32) {
    %c0_i32 = arith.constant 0 : i32
    %c0_i32_0 = arith.constant 0 : i32
    %c0_i32_1 = arith.constant 0 : i32
    return %c0_i32, %c0_i32_0 : i32, i32
  }
  func.func @transform_2(%arg0: i32) -> (i32, i32) {
    %c0_i32 = arith.constant 0 : i32
    %c0_i32_0 = arith.constant 0 : i32
    %c0_i32_1 = arith.constant 0 : i32
    return %c0_i32, %c0_i32_0 : i32, i32
  }
  func.func @transform_3(%arg0: i32) -> (i32, i32) {
    %c0_i32 = arith.constant 0 : i32
    %c0_i32_0 = arith.constant 0 : i32
    return %arg0, %c0_i32 : i32, i32
  }
}

</mosaic_0001>

<bundles_post_ra>
// kernel: tpu_custom_call.1
= control target key start
LH: loop header
LB: loop body
LE: loop exit
PB: predicated region body
PF: predicated region fallthrough
CT: control target
= control target key end

     0   :  { %8 = vsyncpa [#allocation3], 0  ;;  %s501_s0 = inlined_call_operand.hbm [shape: f32[1,1024], index: 0, kind: input, shape index: {}]   ;;  %s502_s1 = inlined_call_operand.hbm [shape: f32[1024,128], index: 1, kind: input, shape index: {}]   ;;  %s503_s2 = inlined_call_operand.vmem [shape: f32[1,128], index: 2, kind: input, shape index: {}]   ;;  %s504_s3 = inlined_call_operand.hbm [shape: f32[1,128], index: 3, kind: output, shape index: {}]  }
   0x1   :  { %9 = vsyncpa [#allocation6], 0 }
   0x2   :  { %10 = vsyncpa [#allocation4], 0  ;;  %s16_s14 = sshll.u32 %s501_s0, 4  ;;  %s454_s15 = smov [#allocation2]   ;;  %s17_s14 = int_to_ptr.hbm [resolvable:$true] %s16_s14 }
   0x3   :  { %s18_s16 = sshll.u32 %s454_s15, 4  ;;  %s26_s19 = sshll.u32 %s502_s1, 4  ;;  %s19_s16 = int_to_ptr.vmem [resolvable:$true] %s18_s16  ;;  %s27_s19 = int_to_ptr.hbm [resolvable:$true] %s26_s19 }
   0x4   :  { %21 = dma.hbm_to_vmem [thread:$0]  %s17_s14, 128, %s19_s16, [#allocation3]  }
   0x5   :  { %s455_s20 = smov [#allocation5]   ;;  %s456_s22 = smov 128  }
   0x6   :  { %s28_s21 = sshll.u32 %s455_s20, 4  ;;  %s457_s23 = smov 8   ;;  %s29_s21 = int_to_ptr.vmem [resolvable:$true] %s28_s21 }
   0x7   :  { %34 = dma.hbm_to_vmem [thread:$0]  %s27_s19, 16384, %s29_s21, [#allocation6], %s456_s22, %s456_s22, %s457_s23  }
   0x8   :  { %448 = dma.done.wait [#allocation3], 128  }
   0x9   :  { %449 = vsyncadd [#allocation3], 4294967168 }
   0xa   :  { %450 = dma.done.wait [#allocation6], 16384  }
   0xb   :  { %451 = vsyncadd [#allocation6], 4294950912  ;;  %v93_v0 = vld [vmem:[#allocation5 + $0x178] sm:$0xff]  ;;  %v92_v2 = vld [vmem:[#allocation5 + $0x170] sm:$0xff]  ;;  %s458_s24 = smov [#allocation7]   ;;  %s360_s28 = sshll.u32 %s504_s3, 4  ;;  %s361_s28 = int_to_ptr.hbm [resolvable:$true] %s360_s28 }
   0xc   :  { %v61_v1 = vld [vmem:[#allocation5 + $0x78] sm:$0xff]  ;;  %232 = vmatpush.msra.mxu2 %v93_v0  ;;  %v60_v4 = vld [vmem:[#allocation5 + $0x70] sm:$0xff]  ;;  %v91_v6 = vld [vmem:[#allocation5 + $0x168] sm:$0xff]  ;;  %s358_s25 = sshll.u32 %s458_s24, 4  ;;  %s359_s25 = int_to_ptr.vmem [resolvable:$true] %s358_s25 }
   0xd   :  { %192 = vmatpush.msra.mxu0 %v61_v1  ;;  %v109_v3 = vld [vmem:[#allocation5 + $0x1f8] sm:$0xff]  ;;  %v108_v7 = vld [vmem:[#allocation5 + $0x1f0] sm:$0xff]  ;;  %v59_v8 = vld [vmem:[#allocation5 + $0x68] sm:$0xff] }
   0xe   :  { %v77_v5 = vld [vmem:[#allocation5 + $0xf8] sm:$0xff]  ;;  %252 = vmatpush.msra.mxu3 %v109_v3  ;;  %233 = vmatpush.msra.mxu2 %v92_v2  ;;  %v76_v9 = vld [vmem:[#allocation5 + $0xf0] sm:$0xff]  ;;  %v107_v10 = vld [vmem:[#allocation5 + $0x1e8] sm:$0xff] }
   0xf   :  { %212 = vmatpush.msra.mxu1 %v77_v5  ;;  %193 = vmatpush.msra.mxu0 %v60_v4  ;;  %v90_v11 = vld [vmem:[#allocation5 + $0x160] sm:$0xff]  ;;  %v75_v13 = vld [vmem:[#allocation5 + $0xe8] sm:$0xff]  ;;  %v89_v16 = vld [vmem:[#allocation5 + $0x158] sm:$0xff] }
  0x10   :  { %253 = vmatpush.msra.mxu3 %v108_v7  ;;  %v58_v12 = vld [vmem:[#allocation5 + $0x60] sm:$0xff]  ;;  %234 = vmatpush.msra.mxu2 %v91_v6  ;;  %v57_v17 = vld [vmem:[#allocation5 + $0x58] sm:$0xff]  ;;  %v88_v20 = vld [vmem:[#allocation5 + $0x150] sm:$0xff] }
  0x11   :  { %213 = vmatpush.msra.mxu1 %v76_v9  ;;  %194 = vmatpush.msra.mxu0 %v59_v8  ;;  %v106_v14 = vld [vmem:[#allocation5 + $0x1e0] sm:$0xff]  ;;  %v105_v18 = vld [vmem:[#allocation5 + $0x1d8] sm:$0xff]  ;;  %v56_v21 = vld [vmem:[#allocation5 + $0x50] sm:$0xff] }
  0x12   :  { %v74_v15 = vld [vmem:[#allocation5 + $0xe0] sm:$0xff]  ;;  %254 = vmatpush.msra.mxu3 %v107_v10  ;;  %235 = vmatpush.msra.mxu2 %v90_v11  ;;  %v73_v19 = vld [vmem:[#allocation5 + $0xd8] sm:$0xff]  ;;  %v104_v22 = vld [vmem:[#allocation5 + $0x1d0] sm:$0xff] }
  0x13   :  { %214 = vmatpush.msra.mxu1 %v75_v13  ;;  %195 = vmatpush.msra.mxu0 %v58_v12  ;;  %v72_v23 = vld [vmem:[#allocation5 + $0xd0] sm:$0xff]  ;;  %v87_v24 = vld [vmem:[#allocation5 + $0x148] sm:$0xff]  ;;  %v86_v28 = vld [vmem:[#allocation5 + $0x140] sm:$0xff] }
  0x14   :  { %255 = vmatpush.msra.mxu3 %v106_v14  ;;  %236 = vmatpush.msra.mxu2 %v89_v16  ;;  %v55_v25 = vld [vmem:[#allocation5 + $0x48] sm:$0xff]  ;;  %v54_v29 = vld [vmem:[#allocation5 + $0x40] sm:$0xff]  ;;  %v85_v32 = vld [vmem:[#allocation5 + $0x138] sm:$0xff] }
  0x15   :  { %215 = vmatpush.msra.mxu1 %v74_v15  ;;  %196 = vmatpush.msra.mxu0 %v57_v17  ;;  %v103_v26 = vld [vmem:[#allocation5 + $0x1c8] sm:$0xff]  ;;  %v102_v30 = vld [vmem:[#allocation5 + $0x1c0] sm:$0xff]  ;;  %v53_v33 = vld [vmem:[#allocation5 + $0x38] sm:$0xff] }
  0x16   :  { %256 = vmatpush.msra.mxu3 %v105_v18  ;;  %237 = vmatpush.msra.mxu2 %v88_v20  ;;  %v71_v27 = vld [vmem:[#allocation5 + $0xc8] sm:$0xff]  ;;  %v70_v31 = vld [vmem:[#allocation5 + $0xc0] sm:$0xff]  ;;  %v101_v34 = vld [vmem:[#allocation5 + $0x1b8] sm:$0xff] }
  0x17   :  { %216 = vmatpush.msra.mxu1 %v73_v19  ;;  %197 = vmatpush.msra.mxu0 %v56_v21  ;;  %v69_v35 = vld [vmem:[#allocation5 + $0xb8] sm:$0xff]  ;;  %v84_v36 = vld [vmem:[#allocation5 + $0x130] sm:$0xff]  ;;  %v83_v40 = vld [vmem:[#allocation5 + $0x128] sm:$0xff] }
  0x18   :  { %257 = vmatpush.msra.mxu3 %v104_v22  ;;  %238 = vmatpush.msra.mxu2 %v87_v24  ;;  %v52_v37 = vld [vmem:[#allocation5 + $0x30] sm:$0xff]  ;;  %v51_v41 = vld [vmem:[#allocation5 + $0x28] sm:$0xff]  ;;  %v82_v44 = vld [vmem:[#allocation5 + $0x120] sm:$0xff] }
  0x19   :  { %217 = vmatpush.msra.mxu1 %v72_v23  ;;  %198 = vmatpush.msra.mxu0 %v55_v25  ;;  %v100_v38 = vld [vmem:[#allocation5 + $0x1b0] sm:$0xff]  ;;  %v99_v42 = vld [vmem:[#allocation5 + $0x1a8] sm:$0xff]  ;;  %v50_v45 = vld [vmem:[#allocation5 + $0x20] sm:$0xff] }
  0x1a   :  { %258 = vmatpush.msra.mxu3 %v103_v26  ;;  %239 = vmatpush.msra.mxu2 %v86_v28  ;;  %v68_v39 = vld [vmem:[#allocation5 + $0xb0] sm:$0xff]  ;;  %v67_v43 = vld [vmem:[#allocation5 + $0xa8] sm:$0xff]  ;;  %v98_v46 = vld [vmem:[#allocation5 + $0x1a0] sm:$0xff] }
  0x1b   :  { %218 = vmatpush.msra.mxu1 %v71_v27  ;;  %199 = vmatpush.msra.mxu0 %v54_v29  ;;  %v66_v47 = vld [vmem:[#allocation5 + $0xa0] sm:$0xff]  ;;  %v81_v48 = vld [vmem:[#allocation5 + $0x118] sm:$0xff]  ;;  %v80_v52 = vld [vmem:[#allocation5 + $0x110] sm:$0xff] }
  0x1c   :  { %259 = vmatpush.msra.mxu3 %v102_v30  ;;  %240 = vmatpush.msra.mxu2 %v85_v32  ;;  %v49_v49 = vld [vmem:[#allocation5 + $0x18] sm:$0xff]  ;;  %v48_v53 = vld [vmem:[#allocation5 + $0x10] sm:$0xff]  ;;  %v79_v56 = vld [vmem:[#allocation5 + $0x108] sm:$0xff] }
  0x1d   :  { %219 = vmatpush.msra.mxu1 %v70_v31  ;;  %200 = vmatpush.msra.mxu0 %v53_v33  ;;  %v97_v50 = vld [vmem:[#allocation5 + $0x198] sm:$0xff]  ;;  %v96_v54 = vld [vmem:[#allocation5 + $0x190] sm:$0xff]  ;;  %v47_v57 = vld [vmem:[#allocation5 + $0x8] sm:$0xff] }
  0x1e   :  { %260 = vmatpush.msra.mxu3 %v101_v34  ;;  %241 = vmatpush.msra.mxu2 %v84_v36  ;;  %v65_v51 = vld [vmem:[#allocation5 + $0x98] sm:$0xff]  ;;  %v64_v55 = vld [vmem:[#allocation5 + $0x90] sm:$0xff]  ;;  %v95_v58 = vld [vmem:[#allocation5 + $0x188] sm:$0xff] }
  0x1f   :  { %220 = vmatpush.msra.mxu1 %v69_v35  ;;  %201 = vmatpush.msra.mxu0 %v52_v37  ;;  %v63_v59 = vld [vmem:[#allocation5 + $0x88] sm:$0xff]  ;;  %v78_v60 = vld [vmem:[#allocation5 + $0x100] sm:$0xff]  ;;  %v157_v62 = vld [vmem:[#allocation5 + $0x378] sm:$0xff] }
  0x20   :  { %261 = vmatpush.msra.mxu3 %v100_v38  ;;  %242 = vmatpush.msra.mxu2 %v83_v40  ;;  %v46_v61 = vld [vmem:[#allocation5] sm:$0xff]  ;;  %v125_v0 = vld [vmem:[#allocation5 + $0x278] sm:$0xff]  ;;  %v156_v2 = vld [vmem:[#allocation5 + $0x370] sm:$0xff] }
  0x21   :  { %221 = vmatpush.msra.mxu1 %v68_v39  ;;  %202 = vmatpush.msra.mxu0 %v51_v41  ;;  %v94_v63 = vld [vmem:[#allocation5 + $0x180] sm:$0xff]  ;;  %v173_v1 = vld [vmem:[#allocation5 + $0x3f8] sm:$0xff]  ;;  %v124_v4 = vld [vmem:[#allocation5 + $0x270] sm:$0xff] }
  0x22   :  { %262 = vmatpush.msra.mxu3 %v99_v42  ;;  %243 = vmatpush.msra.mxu2 %v82_v44  ;;  %v62_v3 = vld [vmem:[#allocation5 + $0x80] sm:$0xff]  ;;  %v141_v5 = vld [vmem:[#allocation5 + $0x2f8] sm:$0xff]  ;;  %v155_v6 = vld [vmem:[#allocation5 + $0x368] sm:$0xff] }
  0x23   :  { %222 = vmatpush.msra.mxu1 %v67_v43  ;;  %203 = vmatpush.msra.mxu0 %v50_v45  ;;  %v172_v7 = vld [vmem:[#allocation5 + $0x3f0] sm:$0xff]  ;;  %v123_v8 = vld [vmem:[#allocation5 + $0x268] sm:$0xff]  ;;  %v154_v10 = vld [vmem:[#allocation5 + $0x360] sm:$0xff] }
  0x24   :  { %263 = vmatpush.msra.mxu3 %v98_v46  ;;  %244 = vmatpush.msra.mxu2 %v81_v48  ;;  %v140_v9 = vld [vmem:[#allocation5 + $0x2f0] sm:$0xff]  ;;  %v171_v11 = vld [vmem:[#allocation5 + $0x3e8] sm:$0xff]  ;;  %v122_v12 = vld [vmem:[#allocation5 + $0x260] sm:$0xff] }
  0x25   :  { %223 = vmatpush.msra.mxu1 %v66_v47  ;;  %204 = vmatpush.msra.mxu0 %v49_v49  ;;  %v139_v13 = vld [vmem:[#allocation5 + $0x2e8] sm:$0xff]  ;;  %v153_v14 = vld [vmem:[#allocation5 + $0x358] sm:$0xff]  ;;  %v170_v15 = vld [vmem:[#allocation5 + $0x3e0] sm:$0xff] }
  0x26   :  { %264 = vmatpush.msra.mxu3 %v97_v50  ;;  %245 = vmatpush.msra.mxu2 %v80_v52  ;;  %v121_v16 = vld [vmem:[#allocation5 + $0x258] sm:$0xff]  ;;  %v138_v17 = vld [vmem:[#allocation5 + $0x2e0] sm:$0xff]  ;;  %v152_v18 = vld [vmem:[#allocation5 + $0x350] sm:$0xff] }
  0x27   :  { %224 = vmatpush.msra.mxu1 %v65_v51  ;;  %205 = vmatpush.msra.mxu0 %v48_v53  ;;  %v169_v19 = vld [vmem:[#allocation5 + $0x3d8] sm:$0xff]  ;;  %v120_v20 = vld [vmem:[#allocation5 + $0x250] sm:$0xff]  ;;  %v151_v22 = vld [vmem:[#allocation5 + $0x348] sm:$0xff] }
  0x28   :  { %265 = vmatpush.msra.mxu3 %v96_v54  ;;  %246 = vmatpush.msra.mxu2 %v79_v56  ;;  %v137_v21 = vld [vmem:[#allocation5 + $0x2d8] sm:$0xff]  ;;  %v168_v23 = vld [vmem:[#allocation5 + $0x3d0] sm:$0xff]  ;;  %v119_v24 = vld [vmem:[#allocation5 + $0x248] sm:$0xff] }
  0x29   :  { %225 = vmatpush.msra.mxu1 %v64_v55  ;;  %206 = vmatpush.msra.mxu0 %v47_v57  ;;  %v136_v25 = vld [vmem:[#allocation5 + $0x2d0] sm:$0xff]  ;;  %v150_v26 = vld [vmem:[#allocation5 + $0x340] sm:$0xff]  ;;  %v167_v27 = vld [vmem:[#allocation5 + $0x3c8] sm:$0xff] }
  0x2a   :  { %266 = vmatpush.msra.mxu3 %v95_v58  ;;  %247 = vmatpush.msra.mxu2 %v78_v60  ;;  %v118_v28 = vld [vmem:[#allocation5 + $0x240] sm:$0xff]  ;;  %v135_v29 = vld [vmem:[#allocation5 + $0x2c8] sm:$0xff]  ;;  %v149_v30 = vld [vmem:[#allocation5 + $0x338] sm:$0xff] }
  0x2b   :  { %226 = vmatpush.msra.mxu1 %v63_v59  ;;  %207 = vmatpush.msra.mxu0 %v46_v61  ;;  %v166_v31 = vld [vmem:[#allocation5 + $0x3c0] sm:$0xff]  ;;  %v117_v32 = vld [vmem:[#allocation5 + $0x238] sm:$0xff]  ;;  %v148_v34 = vld [vmem:[#allocation5 + $0x330] sm:$0xff] }
  0x2c   :  { %312 = vmatpush.msrb.mxu2 %v157_v62  ;;  %267 = vmatpush.msra.mxu3 %v94_v63  ;;  %v134_v33 = vld [vmem:[#allocation5 + $0x2c0] sm:$0xff]  ;;  %v165_v35 = vld [vmem:[#allocation5 + $0x3b8] sm:$0xff]  ;;  %v116_v36 = vld [vmem:[#allocation5 + $0x230] sm:$0xff] }
  0x2d   :  { %272 = vmatpush.msrb.mxu0 %v125_v0  ;;  %227 = vmatpush.msra.mxu1 %v62_v3  ;;  %v133_v37 = vld [vmem:[#allocation5 + $0x2b8] sm:$0xff]  ;;  %v147_v39 = vld [vmem:[#allocation5 + $0x328] sm:$0xff]  ;;  %v164_v40 = vld [vmem:[#allocation5 + $0x3b0] sm:$0xff] }
  0x2e   :  { %332 = vmatpush.msrb.mxu3 %v173_v1  ;;  %313 = vmatpush.msrb.mxu2 %v156_v2  ;;  %v485_v38 = vld [vmem:[#allocation2] sm:$0xff]  ;;  %v115_v41 = vld [vmem:[#allocation5 + $0x228] sm:$0xff]  ;;  %v132_v42 = vld [vmem:[#allocation5 + $0x2b0] sm:$0xff] }
  0x2f   :  { %273 = vmatpush.msrb.mxu0 %v124_v4  ;;  %292 = vmatpush.msrb.mxu1 %v141_v5  ;;  %v146_v43 = vld [vmem:[#allocation5 + $0x320] sm:$0xff]  ;;  %v163_v44 = vld [vmem:[#allocation5 + $0x3a8] sm:$0xff]  ;;  %v178_v45 = vperm.slane %v485_v38, 2  ;;  %v145_v48 = vld [vmem:[#allocation5 + $0x318] sm:$0xff]  ;;  %v176_v49 = vperm.slane %v485_v38, 0  ;;  %v179_v51 = vperm.slane %v485_v38, 3 }
  0x30   :  { %314 = vmatpush.msrb.mxu2 %v155_v6  ;;  %333 = vmatpush.msrb.mxu3 %v172_v7  ;;  %v114_v46 = vld [vmem:[#allocation5 + $0x220] sm:$0xff]  ;;  %v131_v47 = vld [vmem:[#allocation5 + $0x2a8] sm:$0xff]  ;;  %v113_v52 = vld [vmem:[#allocation5 + $0x218] sm:$0xff]  ;;  %v177_v55 = vperm.slane %v485_v38, 1  ;;  %v182_v1 = vperm.slane %v485_v38, 6  ;;  %v180_v5 = vperm.slane %v485_v38, 4 }
  0x31   :  { %274 = vmatpush.msrb.mxu0 %v123_v8  ;;  %293 = vmatpush.msrb.mxu1 %v140_v9  ;;  %v162_v50 = vld [vmem:[#allocation5 + $0x3a0] sm:$0xff]  ;;  %v144_v54 = vld [vmem:[#allocation5 + $0x310] sm:$0xff]  ;;  %v161_v56 = vld [vmem:[#allocation5 + $0x398] sm:$0xff]  ;;  %v183_v6 = vperm.slane %v485_v38, 7  ;;  %v181_v8 = vperm.slane %v485_v38, 5 }
  0x32   :  { %315 = vmatpush.msrb.mxu2 %v154_v10  ;;  %334 = vmatpush.msrb.mxu3 %v171_v11  ;;  %v130_v53 = vld [vmem:[#allocation5 + $0x2a0] sm:$0xff]  ;;  %v112_v57 = vld [vmem:[#allocation5 + $0x210] sm:$0xff]  ;;  %v129_v58 = vld [vmem:[#allocation5 + $0x298] sm:$0xff] }
  0x33   :  { %275 = vmatpush.msrb.mxu0 %v122_v12  ;;  %294 = vmatpush.msrb.mxu1 %v139_v13  ;;  %v143_v59 = vld [vmem:[#allocation5 + $0x308] sm:$0xff]  ;;  %v160_v60 = vld [vmem:[#allocation5 + $0x390] sm:$0xff]  ;;  %v142_v63 = vld [vmem:[#allocation5 + $0x300] sm:$0xff] }
  0x34   :  { %316 = vmatpush.msrb.mxu2 %v153_v14  ;;  %335 = vmatpush.msrb.mxu3 %v170_v15  ;;  %v111_v61 = vld [vmem:[#allocation5 + $0x208] sm:$0xff]  ;;  %v128_v62 = vld [vmem:[#allocation5 + $0x290] sm:$0xff]  ;;  %v110_v2 = vld [vmem:[#allocation5 + $0x200] sm:$0xff] }
  0x35   :  { %276 = vmatpush.msrb.mxu0 %v121_v16  ;;  %295 = vmatpush.msrb.mxu1 %v138_v17  ;;  %v159_v0 = vld [vmem:[#allocation5 + $0x388] sm:$0xff]  ;;  %v158_v4 = vld [vmem:[#allocation5 + $0x380] sm:$0xff]  ;;  %v174_v9 = vld [vmem:[%s503_s2] sm:$0x1] }
  0x36   :  { %317 = vmatpush.msrb.mxu2 %v152_v18  ;;  %336 = vmatpush.msrb.mxu3 %v169_v19  ;;  %v127_v3 = vld [vmem:[#allocation5 + $0x288] sm:$0xff]  ;;  %v126_v7 = vld [vmem:[#allocation5 + $0x280] sm:$0xff] }
  0x37   :  { %277 = vmatpush.msrb.mxu0 %v120_v20  ;;  %296 = vmatpush.msrb.mxu1 %v137_v21 }
  0x38   :  { %318 = vmatpush.msrb.mxu2 %v151_v22  ;;  %337 = vmatpush.msrb.mxu3 %v168_v23 }
  0x39   :  { %278 = vmatpush.msrb.mxu0 %v119_v24  ;;  %297 = vmatpush.msrb.mxu1 %v136_v25 }
  0x3a   :  { %319 = vmatpush.msrb.mxu2 %v150_v26  ;;  %338 = vmatpush.msrb.mxu3 %v167_v27 }
  0x3b   :  { %279 = vmatpush.msrb.mxu0 %v118_v28  ;;  %298 = vmatpush.msrb.mxu1 %v135_v29 }
  0x3c   :  { %320 = vmatpush.msrb.mxu2 %v149_v30  ;;  %339 = vmatpush.msrb.mxu3 %v166_v31 }
  0x3d   :  { %280 = vmatpush.msrb.mxu0 %v117_v32  ;;  %299 = vmatpush.msrb.mxu1 %v134_v33 }
  0x3e   :  { %321 = vmatpush.msrb.mxu2 %v148_v34  ;;  %340 = vmatpush.msrb.mxu3 %v165_v35 }
  0x3f   :  { %281 = vmatpush.msrb.mxu0 %v116_v36  ;;  %300 = vmatpush.msrb.mxu1 %v133_v37 }
  0x40   :  { %322 = vmatpush.msrb.mxu2 %v147_v39  ;;  %341 = vmatpush.msrb.mxu3 %v164_v40 }
  0x41   :  { %282 = vmatpush.msrb.mxu0 %v115_v41  ;;  %301 = vmatpush.msrb.mxu1 %v132_v42 }
  0x42   :  { %323 = vmatpush.msrb.mxu2 %v146_v43  ;;  %342 = vmatpush.msrb.mxu3 %v163_v44 }
  0x43   :  { %248 = vmatmul.f32.vlgmr.msra.gmra.mxu2 %v178_v45  ;;  %283 = vmatpush.msrb.mxu0 %v114_v46 }
  0x44   :  { %302 = vmatpush.msrb.mxu1 %v131_v47  ;;  %324 = vmatpush.msrb.mxu2 %v145_v48 }
  0x45   :  { %343 = vmatpush.msrb.mxu3 %v162_v50  ;;  %208 = vmatmul.f32.vlgmr.msra.gmra.mxu0 %v176_v49 }
  0x46   :  { %268 = vmatmul.f32.vlgmr.msra.gmra.mxu3 %v179_v51  ;;  %284 = vmatpush.msrb.mxu0 %v113_v52 }
  0x47   :  { %303 = vmatpush.msrb.mxu1 %v130_v53  ;;  %325 = vmatpush.msrb.mxu2 %v144_v54 }
  0x48   :  { %344 = vmatpush.msrb.mxu3 %v161_v56  ;;  %228 = vmatmul.f32.vlgmr.msra.gmra.mxu1 %v177_v55 }
  0x49   :  { %285 = vmatpush.msrb.mxu0 %v112_v57  ;;  %304 = vmatpush.msrb.mxu1 %v129_v58 }
  0x4a   :  { %326 = vmatpush.msrb.mxu2 %v143_v59  ;;  %345 = vmatpush.msrb.mxu3 %v160_v60 }
  0x4b   :  { %286 = vmatpush.msrb.mxu0 %v111_v61  ;;  %305 = vmatpush.msrb.mxu1 %v128_v62 }
  0x4c   :  { %327 = vmatpush.msrb.mxu2 %v142_v63  ;;  %346 = vmatpush.msrb.mxu3 %v159_v0 }
  0x4d   :  { %328 = vmatmul.f32.vlgmr.msrb.gmra.mxu2 %v182_v1  ;;  %287 = vmatpush.msrb.mxu0 %v110_v2 }
  0x4e   :  { %306 = vmatpush.msrb.mxu1 %v127_v3  ;;  %347 = vmatpush.msrb.mxu3 %v158_v4 }
  0x4f   :  { %288 = vmatmul.f32.vlgmr.msrb.gmra.mxu0 %v180_v5  ;;  %348 = vmatmul.f32.vlgmr.msrb.gmra.mxu3 %v183_v6 }
  0x50   :  { %307 = vmatpush.msrb.mxu1 %v126_v7 }
  0x51   :  { %308 = vmatmul.f32.vlgmr.msrb.gmra.mxu1 %v181_v8 }
  0xc2   :  { %v209_v10 = vpop.f32.mrf.mxu0 }
  0xc3   :  { %v210_v11 = vadd.f32 %v209_v10, %v174_v9 }
  0xc5   :  { %v229_v12 = vpop.f32.mrf.mxu1 }
  0xc6   :  { %v230_v13 = vadd.f32 %v229_v12, %v210_v11  ;;  %v249_v14 = vpop.f32.mrf.mxu2 }
  0xc8   :  { %v250_v15 = vadd.f32 %v249_v14, %v230_v13 }
  0xc9   :  { %v269_v16 = vpop.f32.mrf.mxu3 }
  0xca   :  { %v270_v17 = vadd.f32 %v269_v16, %v250_v15 }
  0xcc   :  { %v289_v18 = vpop.f32.mrf.mxu0 }
  0xcd   :  { %v290_v19 = vadd.f32 %v289_v18, %v270_v17 }
  0xce   :  { %v309_v20 = vpop.f32.mrf.mxu1 }
  0xcf   :  { %v310_v21 = vadd.f32 %v309_v20, %v290_v19 }
  0xd0   :  { %v329_v22 = vpop.f32.mrf.mxu2 }
  0xd1   :  { %v330_v23 = vadd.f32 %v329_v22, %v310_v21 }
  0xd2   :  { %v349_v24 = vpop.f32.mrf.mxu3 }
  0xd3   :  { %v350_v25 = vadd.f32 %v349_v24, %v330_v23 }
  0xd5   :  { %352 = vst [vmem:[#allocation7] sm:$0x1] %v350_v25 }
  0xd6   :  { %363 = dma.vmem_to_hbm [thread:$0]  %s359_s25, 16, %s361_s28, [#allocation4]  }
  0xd7   :  { %452 = dma.done.wait [#allocation4], 16  }
  0xd8   :  { %453 = vsyncadd [#allocation4], 4294967280 }
  0xd9   :  { %368 = vsyncpa [#allocation3], 1 }
  0xda   :  { %369 = vsyncpa [#allocation6], 1 }
  0xdb   :  { %370 = vsyncpa [#allocation4], 1 }

</bundles_post_ra>
